<compile_context>
chip_gen: v5e
topology: v5e:2x2
jax: 0.10.0
libtpu: 0.0.40
codegen_flags: <defaults>
</compile_context>

<pallas_src>
import math

import jax
import jax.numpy as jnp
from jax.experimental import pallas as pl
from jax.experimental.pallas import tpu as pltpu


def _target_lanes():
    # 256-wide packing feeds the 2x256^2 MXU on v6e/v7x; keep 128 on v5e/v4 (128-wide MXU).
    try:
        kind = jax.devices()[0].device_kind.lower()
    except Exception:
        return 128
    if "v6" in kind or "v7" in kind:
        return 256
    return 128


def _pack_factor(dim, target_lanes):
    """Positions packed per output row so wdim = pack*dim is a multiple of 128."""
    if dim >= target_lanes and dim % 128 == 0:
        return 1
    wdim = math.lcm(dim, 128)
    while wdim < target_lanes and wdim * 2 <= 512:
        wdim *= 2                      # stays a multiple of both dim and 128
    if wdim % dim or wdim % 128 or wdim > 512:
        # TODO(synk): dims with no small lcm with 128 fall back to lane-sparse stores.
        return 1
    return wdim // dim


def make_sin_positional_embedding(freq, w1, b1, w2, b2, *, tile_r=2048):
    """Build a jitted forward fn for torchhandy SinPositionalEmbedding (train=True).

    freq: (1, dim//2). w1/w2: (dim, dim) stored (in, out). b1/b2: (1, dim).
    Returned fn maps positions of any shape -> (prod(shape), dim) float32.
    """
    dim = w1.shape[0]
    pack = _pack_factor(dim, _target_lanes())
    wdim = pack * dim

    # ---- host-side constants, built once (lane-dense packed layout) ----
    freq_full = jnp.concatenate([freq.reshape(-1), freq.reshape(-1)])          # (dim,)
    phase_full = jnp.concatenate(
        [jnp.zeros((dim // 2,), jnp.float32),
         jnp.full((dim // 2,), math.pi / 2, jnp.float32)])                     # sin | cos
    phase_t = jnp.tile(phase_full, pack).reshape(1, wdim)
    b1_t = jnp.tile(b1.reshape(-1), pack).reshape(1, wdim)
    b2_t = jnp.tile(b2.reshape(-1), pack).reshape(1, wdim)
    eye_p = jnp.eye(pack, dtype=jnp.float32)
    w1_b = jnp.kron(eye_p, w1.astype(jnp.float32))          # block-diagonal (wdim, wdim)
    w2_b = jnp.kron(eye_p, w2.astype(jnp.float32))
    # Row p: freq values in lane block [p*dim, (p+1)*dim), zeros elsewhere.
    fblk = jnp.kron(eye_p, freq_full.reshape(1, dim))       # (pack, wdim)

    def kernel(x_ref, fblk_ref, phase_ref, w1_ref, b1_ref, w2_ref, b2_ref, o_ref):
        # x_ref:     (TILE_R, PACK)    pack consecutive positions per row
        # fblk_ref:  (PACK, WDIM)      masked frequency rows
        # phase_ref: (1, WDIM)         0 (sin half) / pi/2 (cos half)
        # w1/w2:     (WDIM, WDIM)      block-diagonal weights, (in, out)
        # b1/b2:     (1, WDIM)
        # o_ref:     (TILE_R, WDIM)    lane-dense packed output
        x = x_ref[...]
        # Position -> lane-block expansion on the VPU (lane-broadcast MACs), not the MXU.
        a = x[:, 0:1] * fblk_ref[0:1, :]
        for p in range(1, pack):                       # static unroll, pack <= 16
            a = a + x[:, p:p + 1] * fblk_ref[p:p + 1, :]
        e = jnp.sin(a + phase_ref[...])                # cos(t) == sin(t + pi/2)

        h = jnp.dot(e, w1_ref[...], preferred_element_type=jnp.float32) + b1_ref[...]
        h = h * jax.nn.sigmoid(h)                      # SiLU
        out = jnp.dot(h, w2_ref[...], preferred_element_type=jnp.float32) + b2_ref[...]
        o_ref[...] = out.astype(o_ref.dtype)

    def apply(x):
        x_flat = x.reshape(-1).astype(jnp.float32)
        n = x_flat.shape[0]
        n_rows = pl.cdiv(n, pack)

        # tile_r: multiple of 8, no bigger than the (rounded) row count.
        tr = min(tile_r, ((n_rows + 7) // 8) * 8)
        tr = max(8, (tr // 8) * 8)
        # Ensure >=2 grid steps when there is enough work (v7x megacore sharding).
        if pl.cdiv(n_rows, tr) < 2 and n_rows >= 16:
            tr = max(8, ((pl.cdiv(n_rows, 2) + 7) // 8) * 8)

        n_rows_pad = pl.cdiv(n_rows, tr) * tr
        n_pad = n_rows_pad * pack
        x_pack = jnp.pad(x_flat, (0, n_pad - n)).reshape(n_rows_pad, pack)

        const = lambda i: (0, 0)
        out = pl.pallas_call(
            kernel,
            out_shape=jax.ShapeDtypeStruct((n_rows_pad, wdim), jnp.float32),
            grid=(n_rows_pad // tr,),
            in_specs=[
                pl.BlockSpec((tr, pack), lambda i: (i, 0)),   # positions (pipelined)
                pl.BlockSpec((pack, wdim), const),            # masked freq rows (resident)
                pl.BlockSpec((1, wdim), const),               # phase
                pl.BlockSpec((wdim, wdim), const),            # w1 block-diag
                pl.BlockSpec((1, wdim), const),               # b1
                pl.BlockSpec((wdim, wdim), const),            # w2 block-diag
                pl.BlockSpec((1, wdim), const),               # b2
            ],
            out_specs=pl.BlockSpec((tr, wdim), lambda i: (i, 0)),
            compiler_params=pltpu.CompilerParams(
                dimension_semantics=("parallel",)),
            cost_estimate=pl.CostEstimate(
                flops=4 * n_rows_pad * wdim * wdim,            # two (.,wdim)x(wdim,wdim) matmuls
                transcendentals=2 * n_rows_pad * wdim,         # sin + sigmoid
                bytes_accessed=(n_pad + n_rows_pad * wdim + 2 * wdim * wdim) * 4),
        )(x_pack, fblk, phase_t, w1_b, b1_t, w2_b, b2_t)

        # Row-major reshape back to per-position rows; drop padding.
        return out.reshape(n_pad, dim)[:n]

    return jax.jit(apply)


def make_params(dim, key):
    """Deterministic synthetic parameters (PyTorch Linear equivalent, stored (in, out))."""
    k1, k2, k3, k4 = jax.random.split(key, 4)
    bound = 1.0 / math.sqrt(dim)
    w1 = jax.random.uniform(k1, (dim, dim), jnp.float32, -bound, bound)
    b1 = jax.random.uniform(k2, (1, dim), jnp.float32, -bound, bound)
    w2 = jax.random.uniform(k3, (dim, dim), jnp.float32, -bound, bound)
    b2 = jax.random.uniform(k4, (1, dim), jnp.float32, -bound, bound)
    return w1, b1, w2, b2


def make_freq(dim):
    half_dim = dim // 2
    scale = math.log(10000.0) / (half_dim - 1)   # requires dim >= 4 (same as PyTorch)
    freq = jnp.exp(jnp.arange(half_dim, dtype=jnp.float32) * -scale)
    return freq.reshape(1, half_dim)


def reference(x, freq, w1, b1, w2, b2):
    x_col = x.reshape(-1, 1).astype(jnp.float32)
    emb = x_col * freq
    e = jnp.concatenate([jnp.sin(emb), jnp.cos(emb)], axis=-1)
    h = e @ w1 + b1
    h = h * jax.nn.sigmoid(h)
    return h @ w2 + b2


if __name__ == "__main__":
    dim = 32           # embedding_dim
    batch, seq = 2, 8  # positions: 16 total

    key = jax.random.PRNGKey(0)
    k_x, k_p = jax.random.split(key)
    x = jax.random.uniform(k_x, (batch, seq), jnp.float32, 0.0, 100.0)  # timesteps

    freq = make_freq(dim)
    w1, b1, w2, b2 = make_params(dim, k_p)

    emb_fn = make_sin_positional_embedding(freq, w1, b1, w2, b2)
    out = jax.block_until_ready(emb_fn(x))

    ref = reference(x, freq, w1, b1, w2, b2)
    assert out.shape == (batch * seq, dim)
    assert jnp.allclose(out, ref, atol=3e-5, rtol=3e-5), "mismatch vs reference"

    print("KERNEL_OK")
</pallas_src>

<mosaic_0001>
module attributes {stable_mosaic.version = 11 : i64} {
  func.func @kernel(%arg0: i32, %arg1: memref<8x4xf32, #tpu.memory_space<vmem>>, %arg2: memref<4x128xf32, #tpu.memory_space<vmem>>, %arg3: memref<1x128xf32, #tpu.memory_space<vmem>>, %arg4: memref<128x128xf32, #tpu.memory_space<vmem>>, %arg5: memref<1x128xf32, #tpu.memory_space<vmem>>, %arg6: memref<128x128xf32, #tpu.memory_space<vmem>>, %arg7: memref<1x128xf32, #tpu.memory_space<vmem>>, %arg8: memref<8x128xf32, #tpu.memory_space<vmem>>) attributes {dimension_semantics = [#tpu.dimension_semantics<parallel>], iteration_bounds = array<i64: 1>, scalar_prefetch = 0 : i64, scratch_operands = 0 : i64, tpu.core_type = #tpu.core_type<tc>, window_params = [{transform_indices = @transform_0, window_bounds = array<i64: 8, 4>}, {pipeline_mode = #tpu.pipeline_mode<synchronous>, transform_indices = @transform_1, window_bounds = array<i64: 4, 128>}, {pipeline_mode = #tpu.pipeline_mode<synchronous>, transform_indices = @transform_2, window_bounds = array<i64: 1, 128>}, {pipeline_mode = #tpu.pipeline_mode<synchronous>, transform_indices = @transform_3, window_bounds = array<i64: 128, 128>}, {pipeline_mode = #tpu.pipeline_mode<synchronous>, transform_indices = @transform_4, window_bounds = array<i64: 1, 128>}, {pipeline_mode = #tpu.pipeline_mode<synchronous>, transform_indices = @transform_5, window_bounds = array<i64: 128, 128>}, {pipeline_mode = #tpu.pipeline_mode<synchronous>, transform_indices = @transform_6, window_bounds = array<i64: 1, 128>}, {transform_indices = @transform_7, window_bounds = array<i64: 8, 128>}]} {
    %c0 = arith.constant 0 : index
    %c0_0 = arith.constant 0 : index
    %0 = vector.load %arg1[%c0, %c0_0] : memref<8x4xf32, #tpu.memory_space<vmem>>, vector<8x4xf32>
    %1 = vector.extract_strided_slice %0 {offsets = [0, 0], sizes = [8, 1], strides = [1, 1]} : vector<8x4xf32> to vector<8x1xf32>
    %c0_1 = arith.constant 0 : index
    %c0_2 = arith.constant 0 : index
    %2 = vector.load %arg2[%c0_1, %c0_2] : memref<4x128xf32, #tpu.memory_space<vmem>>, vector<1x128xf32>
    %3 = vector.broadcast %1 : vector<8x1xf32> to vector<8x128xf32>
    %4 = vector.broadcast %2 : vector<1x128xf32> to vector<8x128xf32>
    %5 = arith.mulf %3, %4 : vector<8x128xf32>
    %6 = vector.extract_strided_slice %0 {offsets = [0, 1], sizes = [8, 1], strides = [1, 1]} : vector<8x4xf32> to vector<8x1xf32>
    %c1 = arith.constant 1 : index
    %c0_3 = arith.constant 0 : index
    %7 = vector.load %arg2[%c1, %c0_3] : memref<4x128xf32, #tpu.memory_space<vmem>>, vector<1x128xf32>
    %8 = vector.broadcast %6 : vector<8x1xf32> to vector<8x128xf32>
    %9 = vector.broadcast %7 : vector<1x128xf32> to vector<8x128xf32>
    %10 = arith.mulf %8, %9 : vector<8x128xf32>
    %11 = arith.addf %5, %10 : vector<8x128xf32>
    %12 = vector.extract_strided_slice %0 {offsets = [0, 2], sizes = [8, 1], strides = [1, 1]} : vector<8x4xf32> to vector<8x1xf32>
    %c2 = arith.constant 2 : index
    %c0_4 = arith.constant 0 : index
    %13 = vector.load %arg2[%c2, %c0_4] : memref<4x128xf32, #tpu.memory_space<vmem>>, vector<1x128xf32>
    %14 = vector.broadcast %12 : vector<8x1xf32> to vector<8x128xf32>
    %15 = vector.broadcast %13 : vector<1x128xf32> to vector<8x128xf32>
    %16 = arith.mulf %14, %15 : vector<8x128xf32>
    %17 = arith.addf %11, %16 : vector<8x128xf32>
    %18 = vector.extract_strided_slice %0 {offsets = [0, 3], sizes = [8, 1], strides = [1, 1]} : vector<8x4xf32> to vector<8x1xf32>
    %c3 = arith.constant 3 : index
    %c0_5 = arith.constant 0 : index
    %19 = vector.load %arg2[%c3, %c0_5] : memref<4x128xf32, #tpu.memory_space<vmem>>, vector<1x128xf32>
    %20 = vector.broadcast %18 : vector<8x1xf32> to vector<8x128xf32>
    %21 = vector.broadcast %19 : vector<1x128xf32> to vector<8x128xf32>
    %22 = arith.mulf %20, %21 : vector<8x128xf32>
    %23 = arith.addf %17, %22 : vector<8x128xf32>
    %c0_6 = arith.constant 0 : index
    %c0_7 = arith.constant 0 : index
    %24 = vector.load %arg3[%c0_6, %c0_7] : memref<1x128xf32, #tpu.memory_space<vmem>>, vector<1x128xf32>
    %25 = vector.broadcast %24 : vector<1x128xf32> to vector<8x128xf32>
    %26 = arith.addf %23, %25 : vector<8x128xf32>
    %27 = math.sin %26 : vector<8x128xf32>
    %c0_8 = arith.constant 0 : index
    %c0_9 = arith.constant 0 : index
    %28 = vector.load %arg4[%c0_8, %c0_9] : memref<128x128xf32, #tpu.memory_space<vmem>>, vector<128x128xf32>
    %cst = arith.constant dense<0.000000e+00> : vector<8x128xf32>
    %29 = tpu.matmul %27, %28, %cst {dimension_numbers = #tpu.dot_dimension_numbers<[1], [0], [0], [1], [0, 0, 1, 1], [], []>} : vector<8x128xf32>, vector<128x128xf32>, vector<8x128xf32> -> vector<8x128xf32>
    %c0_10 = arith.constant 0 : index
    %c0_11 = arith.constant 0 : index
    %30 = vector.load %arg5[%c0_10, %c0_11] : memref<1x128xf32, #tpu.memory_space<vmem>>, vector<1x128xf32>
    %31 = vector.broadcast %30 : vector<1x128xf32> to vector<8x128xf32>
    %32 = arith.addf %29, %31 : vector<8x128xf32>
    %33 = arith.negf %32 : vector<8x128xf32>
    %34 = math.exp %33 : vector<8x128xf32>
    %cst_12 = arith.constant 1.000000e+00 : f32
    %35 = vector.broadcast %cst_12 : f32 to vector<8x128xf32>
    %36 = arith.addf %35, %34 : vector<8x128xf32>
    %37 = arith.divf %35, %36 : vector<8x128xf32>
    %38 = arith.mulf %32, %37 : vector<8x128xf32>
    %c0_13 = arith.constant 0 : index
    %c0_14 = arith.constant 0 : index
    %39 = vector.load %arg6[%c0_13, %c0_14] : memref<128x128xf32, #tpu.memory_space<vmem>>, vector<128x128xf32>
    %cst_15 = arith.constant dense<0.000000e+00> : vector<8x128xf32>
    %40 = tpu.matmul %38, %39, %cst_15 {dimension_numbers = #tpu.dot_dimension_numbers<[1], [0], [0], [1], [0, 0, 1, 1], [], []>} : vector<8x128xf32>, vector<128x128xf32>, vector<8x128xf32> -> vector<8x128xf32>
    %c0_16 = arith.constant 0 : index
    %c0_17 = arith.constant 0 : index
    %41 = vector.load %arg7[%c0_16, %c0_17] : memref<1x128xf32, #tpu.memory_space<vmem>>, vector<1x128xf32>
    %42 = vector.broadcast %41 : vector<1x128xf32> to vector<8x128xf32>
    %43 = arith.addf %40, %42 : vector<8x128xf32>
    %c0_18 = arith.constant 0 : index
    %c0_19 = arith.constant 0 : index
    %44 = vector.load %arg8[%c0_18, %c0_19] : memref<8x128xf32, #tpu.memory_space<vmem>>, vector<8x128xf32>
    tpu.vector_store %arg8[%c0_18, %c0_19], %43 {strides = array<i32>} : memref<8x128xf32, #tpu.memory_space<vmem>>, vector<8x128xf32>,
    return
  }
  func.func @transform_0(%arg0: i32) -> (i32, i32) {
    %c0_i32 = arith.constant 0 : i32
    %c0_i32_0 = arith.constant 0 : i32
    return %arg0, %c0_i32 : i32, i32
  }
  func.func @transform_1(%arg0: i32) -> (i32, i32) {
    %c0_i32 = arith.constant 0 : i32
    %c0_i32_0 = arith.constant 0 : i32
    %c0_i32_1 = arith.constant 0 : i32
    return %c0_i32, %c0_i32_0 : i32, i32
  }
  func.func @transform_2(%arg0: i32) -> (i32, i32) {
    %c0_i32 = arith.constant 0 : i32
    %c0_i32_0 = arith.constant 0 : i32
    %c0_i32_1 = arith.constant 0 : i32
    return %c0_i32, %c0_i32_0 : i32, i32
  }
  func.func @transform_3(%arg0: i32) -> (i32, i32) {
    %c0_i32 = arith.constant 0 : i32
    %c0_i32_0 = arith.constant 0 : i32
    %c0_i32_1 = arith.constant 0 : i32
    return %c0_i32, %c0_i32_0 : i32, i32
  }
  func.func @transform_4(%arg0: i32) -> (i32, i32) {
    %c0_i32 = arith.constant 0 : i32
    %c0_i32_0 = arith.constant 0 : i32
    %c0_i32_1 = arith.constant 0 : i32
    return %c0_i32, %c0_i32_0 : i32, i32
  }
  func.func @transform_5(%arg0: i32) -> (i32, i32) {
    %c0_i32 = arith.constant 0 : i32
    %c0_i32_0 = arith.constant 0 : i32
    %c0_i32_1 = arith.constant 0 : i32
    return %c0_i32, %c0_i32_0 : i32, i32
  }
  func.func @transform_6(%arg0: i32) -> (i32, i32) {
    %c0_i32 = arith.constant 0 : i32
    %c0_i32_0 = arith.constant 0 : i32
    %c0_i32_1 = arith.constant 0 : i32
    return %c0_i32, %c0_i32_0 : i32, i32
  }
  func.func @transform_7(%arg0: i32) -> (i32, i32) {
    %c0_i32 = arith.constant 0 : i32
    %c0_i32_0 = arith.constant 0 : i32
    return %arg0, %c0_i32 : i32, i32
  }
}

</mosaic_0001>

<bundles_post_ra>
// kernel: apply.1
= control target key start
LH: loop header
LB: loop body
LE: loop exit
PB: predicated region body
PF: predicated region fallthrough
CT: control target
= control target key end

     0   :  { %12 = vsyncpa [#allocation3], 0  ;;  %s592_s0 = inlined_call_operand.vmem [shape: f32[8,4], index: 0, kind: input, shape index: {}]   ;;  %s593_s1 = inlined_call_operand.vmem [shape: f32[4,128], index: 1, kind: input, shape index: {}]   ;;  %s594_s2 = inlined_call_operand.vmem [shape: f32[1,128], index: 2, kind: input, shape index: {}]   ;;  %s595_s3 = inlined_call_operand.hbm [shape: f32[128,128], index: 3, kind: input, shape index: {}]   ;;  %s596_s4 = inlined_call_operand.vmem [shape: f32[1,128], index: 4, kind: input, shape index: {}]   ;;  %s597_s5 = inlined_call_operand.hbm [shape: f32[128,128], index: 5, kind: input, shape index: {}]   ;;  %s598_s6 = inlined_call_operand.vmem [shape: f32[1,128], index: 6, kind: input, shape index: {}]   ;;  %s599_s7 = inlined_call_operand.vmem [shape: f32[8,128], index: 7, kind: output, shape index: {}]  }
   0x1   :  { %s24_s26 = sshll.u32 %s595_s3, 4  ;;  %s25_s26 = int_to_ptr.hbm [resolvable:$true] %s24_s26 }
   0x2   :  { %13 = vsyncpa [#allocation5], 0  ;;  %s444_s27 = smov [#allocation2]   ;;  %s39_s8 = sshll.u32 %s597_s5, 4  ;;  %s40_s8 = int_to_ptr.hbm [resolvable:$true] %s39_s8 }
   0x3   :  { %s26_s28 = sshll.u32 %s444_s27, 4  ;;  %s445_s9 = smov 128   ;;  %s27_s28 = int_to_ptr.vmem [resolvable:$true] %s26_s28 }
   0x4   :  { %s446_s10 = smov 8   ;;  %s447_s11 = smov [#allocation4]  }
   0x5   :  { %32 = dma.hbm_to_vmem [thread:$0]  %s25_s26, 2048, %s27_s28, [#allocation3], %s445_s9, %s445_s9, %s446_s10  }
   0x6   :  { %s41_s12 = sshll.u32 %s447_s11, 4  ;;  %s42_s12 = int_to_ptr.vmem [resolvable:$true] %s41_s12 }
   0x7   :  { %47 = dma.hbm_to_vmem [thread:$0]  %s40_s8, 2048, %s42_s12, [#allocation5], %s445_s9, %s445_s9, %s446_s10  }
   0x8   :  { %440 = dma.done.wait [#allocation3], 2048  }
   0x9   :  { %441 = vsyncadd [#allocation3], 4294965248 }
   0xa   :  { %442 = dma.done.wait [#allocation5], 2048  }
   0xb   :  { %443 = vsyncadd [#allocation5], 4294965248  ;;  %v448_v0 = vmov 0   ;;  %v449_v1 = vmov 2   ;;  %v58_v2 = vld [vmem:[%s592_s0] sm:$0xff]  ;;  %v450_v3 = vmov 1  }
   0xc   :  { %376 = vset.pattern.permute.xlu0 %v448_v0  ;;  %378 = vset.pattern.permute.xlu1 %v449_v1  ;;  %v451_v4 = vmov 3   ;;  %v266_v7 = vld [vmem:[#allocation2 + $0x78] sm:$0xff]  ;;  %v265_v8 = vld [vmem:[#allocation2 + $0x70] sm:$0xff]  ;;  %v264_v9 = vld [vmem:[#allocation2 + $0x68] sm:$0xff]  ;;  %v452_v49 = vmov 683565275  }
   0xd   :  { %62 = vperm.xlu0 %376, %v58_v2   ;;  %77 = vperm.xlu1 %378, %v58_v2   ;;  %v263_v10 = vld [vmem:[#allocation2 + $0x60] sm:$0xff]  ;;  %v262_v13 = vld [vmem:[#allocation2 + $0x58] sm:$0xff]  ;;  %v261_v16 = vld [vmem:[#allocation2 + $0x50] sm:$0xff]  ;;  %v453_v51 = vmov 2475754826  }
   0xe   :  { %271 = vmatpush.msra.mxu0 %v266_v7  ;;  %v381_v11 = vld [vmem:[%s593_s1] ss:$0 sm:$0xff]  ;;  %v383_v12 = vld [vmem:[%s593_s1 + $0x1] ss:$0 sm:$0xff]  ;;  %v382_v14 = vld [vmem:[%s593_s1 + $0x2] ss:$0 sm:$0xff] }
   0xf   :  { %v384_v15 = vld [vmem:[%s593_s1 + $0x3] ss:$0 sm:$0xff]  ;;  %v260_v21 = vld [vmem:[#allocation2 + $0x48] sm:$0xff]  ;;  %v385_v26 = vld [vmem:[%s594_s2] ss:$0 sm:$0xff] }
  0x10   :  { %272 = vmatpush.msra.mxu0 %v265_v8  ;;  %v259_v25 = vld [vmem:[#allocation2 + $0x40] sm:$0xff]  ;;  %v258_v28 = vld [vmem:[#allocation2 + $0x38] sm:$0xff]  ;;  %v257_v30 = vld [vmem:[#allocation2 + $0x30] sm:$0xff]  ;;  %v454_v54 = vmov 2131351028  }
  0x11   :  { %v256_v32 = vld [vmem:[#allocation2 + $0x28] sm:$0xff]  ;;  %v255_v34 = vld [vmem:[#allocation2 + $0x20] sm:$0xff]  ;;  %v254_v36 = vld [vmem:[#allocation2 + $0x18] sm:$0xff]  ;;  %v455_v57 = vmov 2102212464  }
  0x12   :  { %273 = vmatpush.msra.mxu0 %v264_v9  ;;  %v253_v38 = vld [vmem:[#allocation2 + $0x10] sm:$0xff]  ;;  %v252_v41 = vld [vmem:[#allocation2 + $0x8] sm:$0xff]  ;;  %v251_v42 = vld [vmem:[#allocation2] sm:$0xff]  ;;  %v456_v60 = vmov 920167782  }
  0x13   :  { %v457_v63 = vmov 1326507024  }
  0x14   :  { %274 = vmatpush.msra.mxu0 %v263_v10 }
  0x15   :  { %377 = vset.pattern.permute.xlu0 %v450_v3  ;;  %379 = vset.pattern.permute.xlu1 %v451_v4 }
  0x16   :  { %69 = vperm.xlu0 %377, %v58_v2   ;;  %85 = vperm.xlu1 %379, %v58_v2  }
  0x17   :  { %275 = vmatpush.msra.mxu0 %v262_v13 }
  0x19   :  { %276 = vmatpush.msra.mxu0 %v261_v16 }
  0x1b   :  { %277 = vmatpush.msra.mxu0 %v260_v21 }
  0x1d   :  { %278 = vmatpush.msra.mxu0 %v259_v25 }
  0x1e   :  { %380 = vset.pattern.permute.xlu0 %v451_v4 }
  0x1f   :  { %279 = vmatpush.msra.mxu0 %v258_v28 }
  0x21   :  { %280 = vmatpush.msra.mxu0 %v257_v30 }
  0x23   :  { %281 = vmatpush.msra.mxu0 %v256_v32 }
  0x25   :  { %282 = vmatpush.msra.mxu0 %v255_v34 }
  0x27   :  { %283 = vmatpush.msra.mxu0 %v254_v36 }
  0x29   :  { %284 = vmatpush.msra.mxu0 %v253_v38 }
  0x2b   :  { %285 = vmatpush.msra.mxu0 %v252_v41 }
  0x2d   :  { %286 = vmatpush.msra.mxu0 %v251_v42 }
  0x7f   :  { %v63_v5 = vpop.permute.xlu0 %62  ;;  %v78_v6 = vpop.permute.xlu1 %77 }
  0x80   :  { %v66_v19 = vmul.f32 %v381_v11, %v63_v5  ;;  %v81_v22 = vmul.f32 %v382_v14, %v78_v6 }
  0x88   :  { %v70_v17 = vpop.permute.xlu0 %69  ;;  %v86_v18 = vpop.permute.xlu1 %85 }
  0x89   :  { %v73_v20 = vmul.f32 %v383_v12, %v70_v17  ;;  %v89_v24 = vmul.f32 %v384_v15, %v86_v18 }
  0x8b   :  { %v74_v23 = vadd.f32 %v73_v20, %v66_v19 }
  0x8d   :  { %v82_v27 = vadd.f32 %v81_v22, %v74_v23 }
  0x8f   :  { %v90_v29 = vadd.f32 %v89_v24, %v82_v27 }
  0x91   :  { %v523_v31 = vadd.f32 %v385_v26, %v90_v29 }
  0x93   :  { %v99_v33 = vand.u32 2139095040, %v523_v31  ;;  %v96_v39 = vand.u32 2147483647, %v523_v31  ;;  %vm98_vm12 = vcmp.lt.s32.totalorder %v523_v31, 0 }
  0x95   :  { %v100_v35 = vshrl.u32 %v99_v33, 23  ;;  %v103_v44 = vand.u32 8388607, %v96_v39  ;;  %vm97_vm13 = vcmp.le.f32.partialorder %v96_v39, 0.7853982 }
  0x97   :  { %v358_v37 = vadd.s32 4294967169, %v100_v35  ;;  %v104_v48 = vor.u32 8388608, %v103_v44 }
  0x99   :  { %v106_v40 = vadd.s32 1, %v358_v37  ;;  %v540_v7 = vshll.u32 %v104_v48, 8 }
  0x9b   :  { %vm107_vm0 = vcmp.gt.s32.totalorder %v106_v40, 0  ;;  %v145_v16 = vand.u32 65535, %v540_v7  ;;  %v146_v17 = vshrl.u32 %v540_v7, 16 }
  0x9c   :  { %v108_v43 = vsel %vm107_vm0, %v106_v40, 0 }
  0x9d   :  { %v110_v45 = vand.u32 31, %v108_v43  ;;  %v531_v47 = vshrl.u32 %v108_v43, 5 }
  0x9f   :  { %v529_v46 = vsub.s32 32, %v110_v45  ;;  %v113_v50 = vshll.u32 %v452_v49, %v110_v45  ;;  %v116_v52 = vshll.u32 %v453_v51, %v110_v45  ;;  %v119_v56 = vshll.u32 %v454_v54, %v110_v45 }
  0xa0   :  { %v122_v59 = vshll.u32 %v455_v57, %v110_v45  ;;  %v125_v62 = vshll.u32 %v456_v60, %v110_v45  ;;  %vm128_vm1 = vcmp.lt.s32.totalorder %v531_v47, 1  ;;  %vm131_vm2 = vcmp.lt.s32.totalorder %v531_v47, 4 }
  0xa1   :  { %v114_v53 = vshrl.u32 %v453_v51, %v529_v46  ;;  %v117_v55 = vshrl.u32 %v454_v54, %v529_v46  ;;  %v120_v58 = vshrl.u32 %v455_v57, %v529_v46  ;;  %v123_v61 = vshrl.u32 %v456_v60, %v529_v46 }
  0xa2   :  { %v126_v1 = vshrl.u32 %v457_v63, %v529_v46  ;;  %vm130_vm3 = vcmp.lt.s32.totalorder %v531_v47, 3  ;;  %vm129_vm4 = vcmp.lt.s32.totalorder %v531_v47, 2  ;;  %v112_v44 = vshrl.u32 %v452_v49, %v529_v46 }
  0xa3   :  { %v115_v2 = vor.u32 %v114_v53, %v113_v50  ;;  %v118_v3 = vor.u32 %v117_v55, %v116_v52  ;;  %v121_v4 = vor.u32 %v120_v58, %v119_v56  ;;  %v124_v5 = vor.u32 %v123_v61, %v122_v59 }
  0xa4   :  { %v127_v6 = vor.u32 %v126_v1, %v125_v62 }
  0xa5   :  { %v136_v8 = vsel %vm128_vm1, %v115_v2, %v118_v3  ;;  %v140_v9 = vsel %vm128_vm1, %v118_v3, %v121_v4  ;;  %v137_v10 = vsel %vm131_vm2, %v124_v5, 920167782  ;;  %v133_v41 = vsel %vm131_vm2, %v121_v4, 2102212464 }
  0xa6   :  { %v141_v11 = vsel %vm131_vm2, %v127_v6, 1326507024  ;;  %v138_v12 = vsel %vm130_vm3, %v121_v4, %v137_v10  ;;  %v132_v53 = vsel %vm128_vm1, %v112_v44, %v115_v2  ;;  %v134_v54 = vsel %vm130_vm3, %v118_v3, %v133_v41 }
  0xa7   :  { %v142_v13 = vsel %vm130_vm3, %v124_v5, %v141_v11  ;;  %v139_v14 = vsel %vm129_vm4, %v136_v8, %v138_v12  ;;  %v135_v46 = vsel %vm129_vm4, %v132_v53, %v134_v54  ;;  %vm239_vm1 = vweird.f32 %v523_v31  ;;  %v326_v53 = vld [vmem:[#allocation4 + $0x78] sm:$0xff]  ;;  %v325_v54 = vld [vmem:[#allocation4 + $0x70] sm:$0xff] }
  0xa8   :  { %v143_v15 = vsel %vm129_vm4, %v140_v9, %v142_v13  ;;  %v169_v20 = vand.u32 65535, %v139_v14  ;;  %v170_v21 = vshrl.u32 %v139_v14, 16  ;;  %v189_v61 = vmul.u32 %v540_v7, %v135_v46  ;;  %331 = vmatpush.msra.mxu1 %v326_v53  ;;  %v318_v46 = vld [vmem:[#allocation4 + $0x38] sm:$0xff] }
  0xa9   :  { %v147_v18 = vand.u32 65535, %v143_v15  ;;  %v148_v19 = vshrl.u32 %v143_v15, 16 }
  0xaa   :  { %v172_v24 = vmul.u32 %v170_v21, %v145_v16  ;;  %v173_v25 = vmul.u32 %v169_v20, %v146_v17  ;;  %v171_v29 = vmul.u32 %v169_v20, %v145_v16  ;;  %v174_v34 = vmul.u32 %v170_v21, %v146_v17  ;;  %332 = vmatpush.msra.mxu1 %v325_v54 }
  0xab   :  { %v150_v22 = vmul.u32 %v148_v19, %v145_v16  ;;  %v151_v23 = vmul.u32 %v147_v18, %v146_v17  ;;  %v149_v26 = vmul.u32 %v147_v18, %v145_v16  ;;  %v152_v28 = vmul.u32 %v148_v19, %v146_v17 }
  0xac   :  { %v175_v30 = vshll.u32 %v172_v24, 16  ;;  %v177_v36 = vshll.u32 %v173_v25, 16  ;;  %v176_v51 = vshrl.u32 %v172_v24, 16  ;;  %v178_v57 = vshrl.u32 %v173_v25, 16 }
  0xad   :  { %v153_v27 = vshll.u32 %v150_v22, 16  ;;  %v155_v32 = vshll.u32 %v151_v23, 16  ;;  %v154_v45 = vshrl.u32 %v150_v22, 16  ;;  %v156_v55 = vshrl.u32 %v151_v23, 16 }
  0xae   :  { %vm179_vm6 = vc.u32 %v171_v29, %v175_v30  ;;  %v181_v37 = vadd.s32 %v175_v30, %v171_v29 }
  0xaf   :  { %vm157_vm5 = vc.u32 %v149_v26, %v153_v27  ;;  %v159_v33 = vadd.s32 %v153_v27, %v149_v26  ;;  %v180_v40 = vsel %vm179_vm6, 1, %v448_v0 }
  0xb0   :  { %v158_v35 = vsel %vm157_vm5, 1, %v448_v0  ;;  %v182_v43 = vadd.s32 %v180_v40, %v174_v34  ;;  %vm183_vm8 = vc.u32 %v181_v37, %v177_v36  ;;  %v185_v60 = vadd.s32 %v181_v37, %v177_v36 }
  0xb1   :  { %v160_v38 = vadd.s32 %v158_v35, %v152_v28  ;;  %vm161_vm7 = vc.u32 %v159_v33, %v155_v32  ;;  %v184_v50 = vsel %vm183_vm8, 1, %v448_v0 }
  0xb2   :  { %v162_v42 = vsel %vm161_vm7, 1, %v448_v0  ;;  %v186_v52 = vadd.s32 %v184_v50, %v182_v43 }
  0xb3   :  { %v164_v48 = vadd.s32 %v162_v42, %v160_v38 }
  0xb4   :  { %v187_v58 = vadd.s32 %v186_v52, %v176_v51 }
  0xb5   :  { %v165_v56 = vadd.s32 %v164_v48, %v154_v45 }
  0xb6   :  { %v188_v49 = vadd.s32 %v187_v58, %v178_v57  ;;  %v322_v57 = vld [vmem:[#allocation4 + $0x58] sm:$0xff]  ;;  %v321_v58 = vld [vmem:[#allocation4 + $0x50] sm:$0xff] }
  0xb7   :  { %v166_v59 = vadd.s32 %v165_v56, %v156_v55  ;;  %v324_v55 = vld [vmem:[#allocation4 + $0x68] sm:$0xff]  ;;  %v323_v56 = vld [vmem:[#allocation4 + $0x60] sm:$0xff] }
  0xb8   :  { %v192_v0 = vadd.s32 1, %v188_v49  ;;  %333 = vmatpush.msra.mxu1 %v324_v55 }
  0xb9   :  { %vm191_vm9 = vc.u32 %v166_v59, %v185_v60  ;;  %v190_v47 = vadd.s32 %v185_v60, %v166_v59  ;;  %v320_v59 = vld [vmem:[#allocation4 + $0x48] sm:$0xff]  ;;  %v319_v60 = vld [vmem:[#allocation4 + $0x40] sm:$0xff] }
  0xba   :  { %v193_v62 = vsel %vm191_vm9, %v192_v0, %v188_v49  ;;  %334 = vmatpush.msra.mxu1 %v323_v56  ;;  %v316_v49 = vld [vmem:[#allocation4 + $0x28] sm:$0xff]  ;;  %v315_v0 = vld [vmem:[#allocation4 + $0x20] sm:$0xff] }
  0xbb   :  { %v194_v63 = vadd.s32 %v193_v62, %v189_v61  ;;  %v314_v61 = vld [vmem:[#allocation4 + $0x18] sm:$0xff]  ;;  %v313_v62 = vld [vmem:[#allocation4 + $0x10] sm:$0xff] }
  0xbc   :  { %335 = vmatpush.msra.mxu1 %v322_v57 }
  0xbd   :  { %v195_v1 = vadd.s32 536870912, %v194_v63 }
  0xbe   :  { %336 = vmatpush.msra.mxu1 %v321_v58 }
  0xbf   :  { %v196_v2 = vshrl.u32 %v195_v1, 30  ;;  %v386_v1 = vld [vmem:[%s596_s4] ss:$0 sm:$0xff] }
  0xc0   :  { %337 = vmatpush.msra.mxu1 %v320_v59 }
  0xc1   :  { %v197_v4 = vshll.u32 %v196_v2, 30  ;;  %v220_v23 = vsub.s32 4, %v196_v2 }
  0xc2   :  { %338 = vmatpush.msra.mxu1 %v319_v60 }
  0xc3   :  { %v198_v3 = vsub.s32 %v194_v63, %v197_v4  ;;  %v221_v28 = vsel %vm98_vm12, %v220_v23, %v196_v2  ;;  %v312_v63 = vld [vmem:[#allocation4 + $0x8] sm:$0xff]  ;;  %v311_v2 = vld [vmem:[#allocation4] sm:$0xff] }
  0xc4   :  { %v223_v32 = vsel %vm97_vm13, 0, %v221_v28  ;;  %339 = vmatpush.msra.mxu1 %v318_v46 }
  0xc5   :  { %vm199_vm10 = vcmp.lt.s32.totalorder %v198_v3, 0  ;;  %v200_v5 = vsub.s32 0, %v198_v3  ;;  %v240_v37 = vadd.s32 3, %v223_v32 }
  0xc7   :  { %v201_v6 = vsel %vm199_vm10, %v200_v5, %v198_v3  ;;  %v241_v42 = vand.u32 3, %v240_v37 }
  0xc8   :  { %v202_v8 = vclz %v201_v6 }
  0xc9   :  { %vm243_vm14 = vcmp.eq.s32.totalorder %v241_v42, 0  ;;  %vm246_vm15 = vcmp.eq.s32.totalorder %v241_v42, 2  ;;  %vm242_vm0 = vcmp.lt.s32.totalorder %v241_v42, 2 }
  0xca   :  { %v359_v9 = vadd.s32 4294967294, %v202_v8 }
  0xcc   :  { %vm360_vm11 = vcmp.lt.s32.totalorder %v359_v9, 0 }
  0xcd   :  { %v205_v10 = vsel %vm360_vm11, 0, %v359_v9 }
  0xce   :  { %v206_v11 = vsub.s32 32, %v205_v10  ;;  %v210_v12 = vsub.s32 4294967266, %v205_v10  ;;  %v207_v13 = vshll.u32 %v198_v3, %v205_v10 }
  0xd0   :  { %v208_v14 = vshrl.u32 %v190_v47, %v206_v11  ;;  %v211_v15 = vadd.s32 127, %v210_v12 }
  0xd2   :  { %v209_v7 = vor.u32 %v208_v14, %v207_v13  ;;  %v212_v16 = vshll.u32 %v211_v15, 23 }
  0xd4   :  { %v213_v17 = vor.u32 4788187, %v212_v16  ;;  %v216_v19 = vcvt.s32.f32 %v209_v7 }
  0xd6   :  { %v214_v18 = vand.u32 2147483647, %v213_v17 }
  0xd8   :  { %v217_v20 = vmul.f32 %v216_v19, %v214_v18  ;;  %v387_v18 = vld [vmem:[%s598_s6] ss:$0 sm:$0xff] }
  0xda   :  { %v218_v21 = vxor.u32 2147483648, %v217_v20 }
  0xdc   :  { %v219_v22 = vsel %vm98_vm12, %v218_v21, %v217_v20 }
  0xdd   :  { %v222_v24 = vsel %vm97_vm13, %v523_v31, %v219_v22  ;;  %v317_v31 = vld [vmem:[#allocation4 + $0x30] sm:$0xff] }
  0xde   :  { %v224_v25 = vmul.f32 %v222_v24, %v222_v24  ;;  %340 = vmatpush.msra.mxu1 %v317_v31 }
  0xe0   :  { %v225_v26 = vmul.f32 -0.001358992, %v224_v25  ;;  %v232_v27 = vmul.f32 -0.00019511016, %v224_v25  ;;  %341 = vmatpush.msra.mxu1 %v316_v49 }
  0xe2   :  { %v226_v29 = vadd.f32 0.041655596, %v225_v26  ;;  %v233_v30 = vadd.f32 0.008332121, %v232_v27  ;;  %342 = vmatpush.msra.mxu1 %v315_v0 }
  0xe4   :  { %v227_v33 = vmul.f32 %v226_v29, %v224_v25  ;;  %v234_v34 = vmul.f32 %v233_v30, %v224_v25  ;;  %343 = vmatpush.msra.mxu1 %v314_v61 }
  0xe6   :  { %v228_v35 = vadd.f32 -0.4999988, %v227_v33  ;;  %v235_v36 = vadd.f32 -0.16666654, %v234_v34  ;;  %344 = vmatpush.msra.mxu1 %v313_v62 }
  0xe8   :  { %v229_v38 = vmul.f32 %v228_v35, %v224_v25  ;;  %v236_v40 = vmul.f32 %v235_v36, %v224_v25  ;;  %345 = vmatpush.msra.mxu1 %v312_v63 }
  0xea   :  { %v230_v41 = vadd.f32 1.0, %v229_v38  ;;  %v237_v39 = vadd.f32 1.0, %v236_v40  ;;  %346 = vmatpush.msra.mxu1 %v311_v2 }
  0xec   :  { %v238_v43 = vmul.f32 %v237_v39, %v222_v24  ;;  %v247_v44 = vxor.u32 2147483648, %v230_v41 }
  0xee   :  { %v244_v45 = vxor.u32 2147483648, %v238_v43  ;;  %v248_v50 = vsel %vm246_vm15, %v247_v44, %v238_v43 }
  0xf0   :  { %v245_v48 = vsel %vm243_vm14, %v230_v41, %v244_v45 }
  0xf1   :  { %v249_v51 = vsel %vm242_vm0, %v245_v48, %v248_v50 }
  0xf2   :  { %v250_v52 = vsel %vm239_vm1, nan, %v249_v51 }
  0xf3   :  { %287 = vmatmul.f32.vlgmr.msra.gmra.mxu0 %v250_v52 }
 0x170   :  { %v288_v4 = vpop.f32.mrf.mxu0 }
 0x171   :  { %v289_v3 = vadd.f32 %v386_v1, %v288_v4 }
 0x173   :  { %v361_v5 = vmul.f32 -1.442695, %v289_v3 }
 0x175   :  { %388 = vpow2.f32 %v361_v5 }
 0x17b   :  { %v389_v6 = vpop.eup %388 }
 0x17c   :  { %v294_v8 = vadd.f32 1.0, %v389_v6 }
 0x17e   :  { %390 = vrcp.f32 %v294_v8  ;;  %v306_v11 = vand.u32 2147483648, %v294_v8  ;;  %v304_v13 = vand.u32 2147483647, %v294_v8  ;;  %vm300_vm3 = vweird.f32 %v294_v8 }
 0x180   :  { %v307_v15 = vor.u32 1.1754944e-38, %v306_v11  ;;  %vm305_vm5 = vcmp.eq.f32.partialorder %v304_v13, 8.507059e+37 }
 0x184   :  { %v391_v9 = vpop.eup %390 }
 0x185   :  { %v296_v10 = vmul.f32 %v391_v9, %v294_v8  ;;  %vm301_vm2 = vweird.f32 %v391_v9 }
 0x186   :  { %vm302_vm4 = vmor %vm300_vm3, %vm301_vm2 }
 0x187   :  { %v297_v47 = vsub.f32 1.0, %v296_v10 }
 0x189   :  { %v298_v12 = vmul.f32 %v391_v9, %v297_v47 }
 0x18b   :  { %v299_v14 = vadd.f32 %v391_v9, %v298_v12 }
 0x18d   :  { %v303_v7 = vsel %vm302_vm4, %v391_v9, %v299_v14 }
 0x18e   :  { %v308_v16 = vsel %vm305_vm5, %v307_v15, %v303_v7 }
 0x18f   :  { %v310_v17 = vmul.f32 %v308_v16, %v289_v3 }
 0x191   :  { %347 = vmatmul.f32.vlgmr.msra.gmra.mxu1 %v310_v17 }
 0x20e   :  { %v348_v19 = vpop.f32.mrf.mxu1 }
 0x20f   :  { %v349_v20 = vadd.f32 %v387_v18, %v348_v19 }
 0x211   :  { %351 = vst [vmem:[%s599_s7] sm:$0xff] %v349_v20 }
 0x212   :  { %356 = vsyncpa [#allocation3], 1 }
 0x213   :  { %357 = vsyncpa [#allocation5], 1 }

</bundles_post_ra>
